<compile_context>
chip_gen: v7x
topology: tpu7x:2x2x1
jax: 0.10.0
libtpu: 0.0.40
codegen_flags: <defaults>
</compile_context>

<pallas_src>
import functools

import jax
import jax.numpy as jnp
from jax.experimental import pallas as pl
from jax.experimental.pallas import tpu as pltpu


def _additive_attention_kernel(enc_ref, dec_ref, w1t_ref, w2t_ref, b12_ref,
                               v_row_ref, out_ref, *, s_valid):
    TB, S, E = enc_ref.shape

    enc = enc_ref[...]                                   # [TB, S, E] (bf16)
    dec = dec_ref[...]                                   # [TB, D]   (bf16)

    # attention_w1(encoder_outputs): one big MXU matmul on [TB*S, E] x [E, E].
    # S is padded wrapper-side to a multiple of 8, so the reshapes are views.
    w1_enc = jnp.dot(enc.reshape(TB * S, E), w1t_ref[...],
                     preferred_element_type=jnp.float32)            # [TB*S, E]

    # attention_w2(decoder_output) with b1 folded in (b12 = b1 + b2).
    w2_dec = jnp.dot(dec, w2t_ref[...],
                     preferred_element_type=jnp.float32) + b12_ref[...]   # [TB, E]

    # tanh(W1 e + W2 d + b1 + b2), decoder term broadcast over S (f32).
    h = jnp.tanh(w1_enc.reshape(TB, S, E) + w2_dec[:, None, :])     # [TB, S, E]

    # attention_v(h): VPU multiply + lane reduce against the [1, E] row of v.
    # (attention_v's bias is a constant shift of every score -> cancels in the
    #  softmax and is dropped.)
    scores = jnp.sum(h * v_row_ref[...], axis=-1)                   # [TB, S]

    # Mask padded sequence positions (only emitted when S was padded).
    if s_valid != S:
        col = jax.lax.broadcasted_iota(jnp.int32, (TB, S), 1)
        scores = jnp.where(col < s_valid, scores, -1e30)

    # Lane-major softmax over the sequence axis (dim=1 of the PyTorch module).
    # Exact divide: denom is only [TB, 1], approx reciprocal is not worth the
    # accuracy loss.
    m = jnp.max(scores, axis=-1, keepdims=True)                     # [TB, 1]
    e = jnp.exp(scores - m)                                         # [TB, S]
    attn = e / jnp.sum(e, axis=-1, keepdims=True)                   # [TB, S]

    # Context: VPU multiply + sublane (XLU) reduce over S — avoids TB tiny
    # M=1 MXU matmuls and overlaps with MXU work of neighbouring steps.
    ctx = jnp.sum(attn[:, :, None] * enc.astype(jnp.float32), axis=1)   # [TB, E]
    out_ref[...] = ctx.astype(out_ref.dtype)


def additive_attention(encoder_outputs, decoder_output, params,
                       tb=256, compute_dtype=jnp.bfloat16):
    """params = (w1t [E,E], b1 [1,E], w2t [D,E], b2 [1,E], v_row [1,E], bv [1,1]).

    Weights are passed pre-transposed ([in, out]); bv is accepted for fidelity
    with the PyTorch module but dropped (softmax-invariant constant shift).
    """
    B, S, E = encoder_outputs.shape
    D = decoder_output.shape[-1]
    w1t, b1, w2t, b2, v_row, _bv = params   # bv dropped (cancels in softmax)

    # bf16 ingestion of the big / HBM-dominant operands; biases & v stay f32.
    enc = encoder_outputs.astype(compute_dtype)
    dec = decoder_output.reshape(B, D).astype(compute_dtype)
    w1t_c = w1t.astype(compute_dtype)
    w2t_c = w2t.astype(compute_dtype)
    b12 = (b1 + b2).astype(jnp.float32)        # b1 folded into the decoder bias
    v_row_f = v_row.astype(jnp.float32)

    # Pad S to a sublane multiple so the in-kernel reshapes are free views.
    s_valid = S
    Sp = -(-S // 8) * 8
    if Sp != S:
        enc = jnp.pad(enc, ((0, 0), (0, Sp - S), (0, 0)))

    # Batch tile: target `tb` rows/step; split small batches into >=2 steps so
    # both v7x TensorCores get work. Round to a sublane multiple and pad B
    # (no divisor search, so awkward B never degrades to a (1, E) tile).
    tb_eff = min(tb, B)
    if B <= tb and B > 8:
        tb_eff = -(-B // 2)
    tb_eff = max(8, -(-tb_eff // 8) * 8)
    grid_b = -(-B // tb_eff)
    Bp = grid_b * tb_eff
    if Bp != B:
        enc = jnp.pad(enc, ((0, Bp - B), (0, 0), (0, 0)))
        dec = jnp.pad(dec, ((0, Bp - B), (0, 0)))

    # VMEM budget: double-buffered enc/dec/out blocks + f32 intermediates
    # (w1_enc and h). Keep >=32 MiB scoped limit (v5e default is only 16 MiB),
    # capped at 56 MiB to leave headroom on v7x's 64 MiB physical VMEM.
    esize = jnp.dtype(compute_dtype).itemsize
    vmem_est = (2 * (tb_eff * Sp * E + tb_eff * D) * esize      # pipelined inputs
                + 2 * tb_eff * E * 4                            # pipelined output
                + 2 * tb_eff * Sp * E * 4                       # w1_enc + h (f32)
                + (E * E + D * E) * esize + 3 * E * 4)          # resident weights
    vmem_limit = int(min(56 * 1024 * 1024, max(32 * 1024 * 1024, 2 * vmem_est)))

    kernel = functools.partial(_additive_attention_kernel, s_valid=s_valid)

    out = pl.pallas_call(
        kernel,
        out_shape=jax.ShapeDtypeStruct((Bp, E), jnp.float32),
        grid_spec=pltpu.PrefetchScalarGridSpec(
            num_scalar_prefetch=0,
            grid=(grid_b,),
            in_specs=[
                pl.BlockSpec((tb_eff, Sp, E), lambda b: (b, 0, 0)),  # encoder
                pl.BlockSpec((tb_eff, D), lambda b: (b, 0)),         # decoder
                pl.BlockSpec((E, E), lambda b: (0, 0)),              # W1^T (resident)
                pl.BlockSpec((D, E), lambda b: (0, 0)),              # W2^T (resident)
                pl.BlockSpec((1, E), lambda b: (0, 0)),              # b1 + b2
                pl.BlockSpec((1, E), lambda b: (0, 0)),              # v as a row
            ],
            out_specs=pl.BlockSpec((tb_eff, E), lambda b: (b, 0)),
        ),
        compiler_params=pltpu.CompilerParams(
            dimension_semantics=("parallel",),
            vmem_limit_bytes=vmem_limit),
    )(enc, dec, w1t_c, w2t_c, b12, v_row_f)

    # TODO(synk): for production shapes with E < 128 a lane-dense output slab
    # (e.g. [B, 32] -> [B/4, 128]) would avoid masked partial stores.
    return out[:B]


def reference(encoder_outputs, decoder_output, params,
              compute_dtype=jnp.bfloat16):
    """Pure-JAX reference of the PyTorch forward, using the same bf16-cast
    inputs the kernel ingests (promoted to f32, exact math)."""
    w1t, b1, w2t, b2, v_row, bv = params
    cast = lambda x: x.astype(compute_dtype).astype(jnp.float32)
    enc = cast(encoder_outputs)
    dec = cast(decoder_output)
    w1_enc = enc @ cast(w1t) + b1                             # [B,S,E]
    w2_dec = dec @ cast(w2t) + b2                             # [B,1,E]
    h = jnp.tanh(w1_enc + w2_dec)                             # [B,S,E]
    scores = jnp.einsum('bse,e->bs', h, v_row[0]) + bv[0, 0]  # [B,S]
    attn = jax.nn.softmax(scores, axis=1)                     # [B,S]
    return jnp.sum(enc * attn[..., None], axis=1)             # [B,E]


if __name__ == "__main__":
    # batch, seq, enc_hidden_dim, dec_hidden_dim (small, but B=16 still gives
    # 2 parallel grid steps with the 8-row minimum batch tile).
    B, S, E, D = 16, 8, 32, 32

    key = jax.random.PRNGKey(0)
    k = jax.random.split(key, 8)

    # Deterministic parameter init (PyTorch-Linear-style uniform fan-in bound).
    bound_e = 1.0 / jnp.sqrt(E)
    bound_d = 1.0 / jnp.sqrt(D)
    w1t = jax.random.uniform(k[0], (E, E), jnp.float32, -bound_e, bound_e)    # W1^T
    b1 = jax.random.uniform(k[1], (1, E), jnp.float32, -bound_e, bound_e)
    w2t = jax.random.uniform(k[2], (D, E), jnp.float32, -bound_d, bound_d)    # W2^T
    b2 = jax.random.uniform(k[3], (1, E), jnp.float32, -bound_d, bound_d)
    v_row = jax.random.uniform(k[4], (1, E), jnp.float32, -bound_e, bound_e)  # v as row
    bv = jax.random.uniform(k[5], (1, 1), jnp.float32, -bound_e, bound_e)
    params = (w1t, b1, w2t, b2, v_row, bv)

    encoder_outputs = jax.random.normal(k[6], (B, S, E), jnp.float32)
    decoder_output = jax.random.normal(k[7], (B, 1, D), jnp.float32)

    ctx = additive_attention(encoder_outputs, decoder_output, params)
    ctx = jax.block_until_ready(ctx)

    ref = reference(encoder_outputs, decoder_output, params)
    assert ctx.shape == (B, E)
    assert jnp.allclose(ctx, ref, atol=2e-4, rtol=2e-3), (
        "mismatch vs reference, max abs diff = %g" % float(jnp.max(jnp.abs(ctx - ref))))

    # TODO(synk): the PyTorch module's should_print / att_mat CPU-side logging
    # of attention rows has no in-kernel equivalent and is omitted.
    print("KERNEL_OK")
</pallas_src>

<mosaic_0001>
module attributes {stable_mosaic.version = 11 : i64} {
  func.func @_additive_attention_kernel(%arg0: i32, %arg1: memref<8x8x32xbf16, #tpu.memory_space<vmem>>, %arg2: memref<8x32xbf16, #tpu.memory_space<vmem>>, %arg3: memref<32x32xbf16, #tpu.memory_space<vmem>>, %arg4: memref<32x32xbf16, #tpu.memory_space<vmem>>, %arg5: memref<1x32xf32, #tpu.memory_space<vmem>>, %arg6: memref<1x32xf32, #tpu.memory_space<vmem>>, %arg7: memref<8x32xf32, #tpu.memory_space<vmem>>) attributes {dimension_semantics = [#tpu.dimension_semantics<parallel>], iteration_bounds = array<i64: 2>, scalar_prefetch = 0 : i64, scratch_operands = 0 : i64, tpu.core_type = #tpu.core_type<tc>, window_params = [{transform_indices = @transform_0, window_bounds = array<i64: 8, 8, 32>}, {transform_indices = @transform_1, window_bounds = array<i64: 8, 32>}, {pipeline_mode = #tpu.pipeline_mode<synchronous>, transform_indices = @transform_2, window_bounds = array<i64: 32, 32>}, {pipeline_mode = #tpu.pipeline_mode<synchronous>, transform_indices = @transform_3, window_bounds = array<i64: 32, 32>}, {pipeline_mode = #tpu.pipeline_mode<synchronous>, transform_indices = @transform_4, window_bounds = array<i64: 1, 32>}, {pipeline_mode = #tpu.pipeline_mode<synchronous>, transform_indices = @transform_5, window_bounds = array<i64: 1, 32>}, {transform_indices = @transform_6, window_bounds = array<i64: 8, 32>}]} {
    %c0 = arith.constant 0 : index
    %c0_0 = arith.constant 0 : index
    %c0_1 = arith.constant 0 : index
    %0 = vector.load %arg1[%c0, %c0_0, %c0_1] : memref<8x8x32xbf16, #tpu.memory_space<vmem>>, vector<8x8x32xbf16>
    %c0_2 = arith.constant 0 : index
    %c0_3 = arith.constant 0 : index
    %1 = vector.load %arg2[%c0_2, %c0_3] : memref<8x32xbf16, #tpu.memory_space<vmem>>, vector<8x32xbf16>
    %2 = vector.shape_cast %0 : vector<8x8x32xbf16> to vector<64x32xbf16>
    %c0_4 = arith.constant 0 : index
    %c0_5 = arith.constant 0 : index
    %3 = vector.load %arg3[%c0_4, %c0_5] : memref<32x32xbf16, #tpu.memory_space<vmem>>, vector<32x32xbf16>
    %cst = arith.constant dense<0.000000e+00> : vector<64x32xf32>
    %4 = tpu.matmul %2, %3, %cst {dimension_numbers = #tpu.dot_dimension_numbers<[1], [0], [0], [1], [0, 0, 1, 1], [], []>} : vector<64x32xbf16>, vector<32x32xbf16>, vector<64x32xf32> -> vector<64x32xf32>
    %c0_6 = arith.constant 0 : index
    %c0_7 = arith.constant 0 : index
    %5 = vector.load %arg4[%c0_6, %c0_7] : memref<32x32xbf16, #tpu.memory_space<vmem>>, vector<32x32xbf16>
    %cst_8 = arith.constant dense<0.000000e+00> : vector<8x32xf32>
    %6 = tpu.matmul %1, %5, %cst_8 {dimension_numbers = #tpu.dot_dimension_numbers<[1], [0], [0], [1], [0, 0, 1, 1], [], []>} : vector<8x32xbf16>, vector<32x32xbf16>, vector<8x32xf32> -> vector<8x32xf32>
    %c0_9 = arith.constant 0 : index
    %c0_10 = arith.constant 0 : index
    %7 = vector.load %arg5[%c0_9, %c0_10] : memref<1x32xf32, #tpu.memory_space<vmem>>, vector<1x32xf32>
    %8 = vector.broadcast %7 : vector<1x32xf32> to vector<8x32xf32>
    %9 = arith.addf %6, %8 : vector<8x32xf32>
    %10 = vector.shape_cast %4 : vector<64x32xf32> to vector<8x8x32xf32>
    %11 = vector.shape_cast %9 : vector<8x32xf32> to vector<8x1x32xf32>
    %12 = vector.broadcast %11 : vector<8x1x32xf32> to vector<8x8x32xf32>
    %13 = arith.addf %10, %12 : vector<8x8x32xf32>
    %14 = math.tanh %13 : vector<8x8x32xf32>
    %c0_11 = arith.constant 0 : index
    %c0_12 = arith.constant 0 : index
    %15 = vector.load %arg6[%c0_11, %c0_12] : memref<1x32xf32, #tpu.memory_space<vmem>>, vector<1x32xf32>
    %16 = vector.shape_cast %15 : vector<1x32xf32> to vector<1x1x32xf32>
    %17 = vector.broadcast %16 : vector<1x1x32xf32> to vector<8x8x32xf32>
    %18 = arith.mulf %14, %17 : vector<8x8x32xf32>
    %cst_13 = arith.constant dense<0.000000e+00> : vector<8x8xf32>
    %19 = vector.multi_reduction <add>, %18, %cst_13 [2] : vector<8x8x32xf32> to vector<8x8xf32>
    %cst_14 = arith.constant dense<0xFF800000> : vector<8xf32>
    %20 = vector.multi_reduction <maximumf>, %19, %cst_14 [1] : vector<8x8xf32> to vector<8xf32>
    %21 = vector.shape_cast %20 : vector<8xf32> to vector<8x1xf32>
    %22 = vector.broadcast %21 : vector<8x1xf32> to vector<8x8xf32>
    %23 = arith.subf %19, %22 : vector<8x8xf32>
    %24 = math.exp %23 : vector<8x8xf32>
    %cst_15 = arith.constant dense<0.000000e+00> : vector<8xf32>
    %25 = vector.multi_reduction <add>, %24, %cst_15 [1] : vector<8x8xf32> to vector<8xf32>
    %26 = vector.shape_cast %25 : vector<8xf32> to vector<8x1xf32>
    %27 = vector.broadcast %26 : vector<8x1xf32> to vector<8x8xf32>
    %28 = arith.divf %24, %27 : vector<8x8xf32>
    %29 = vector.shape_cast %28 : vector<8x8xf32> to vector<8x8x1xf32>
    %30 = arith.extf %0 : vector<8x8x32xbf16> to vector<8x8x32xf32>
    %31 = vector.broadcast %29 : vector<8x8x1xf32> to vector<8x8x32xf32>
    %32 = arith.mulf %31, %30 : vector<8x8x32xf32>
    %cst_16 = arith.constant dense<0.000000e+00> : vector<8x32xf32>
    %33 = vector.multi_reduction <add>, %32, %cst_16 [1] : vector<8x8x32xf32> to vector<8x32xf32>
    %c0_17 = arith.constant 0 : index
    %c0_18 = arith.constant 0 : index
    %34 = vector.load %arg7[%c0_17, %c0_18] : memref<8x32xf32, #tpu.memory_space<vmem>>, vector<8x32xf32>
    tpu.vector_store %arg7[%c0_17, %c0_18], %33 {strides = array<i32>} : memref<8x32xf32, #tpu.memory_space<vmem>>, vector<8x32xf32>,
    return
  }
  func.func @transform_0(%arg0: i32) -> (i32, i32, i32) {
    %c0_i32 = arith.constant 0 : i32
    %c0_i32_0 = arith.constant 0 : i32
    %c0_i32_1 = arith.constant 0 : i32
    return %arg0, %c0_i32, %c0_i32_0 : i32, i32, i32
  }
  func.func @transform_1(%arg0: i32) -> (i32, i32) {
    %c0_i32 = arith.constant 0 : i32
    %c0_i32_0 = arith.constant 0 : i32
    return %arg0, %c0_i32 : i32, i32
  }
  func.func @transform_2(%arg0: i32) -> (i32, i32) {
    %c0_i32 = arith.constant 0 : i32
    %c0_i32_0 = arith.constant 0 : i32
    %c0_i32_1 = arith.constant 0 : i32
    return %c0_i32, %c0_i32_0 : i32, i32
  }
  func.func @transform_3(%arg0: i32) -> (i32, i32) {
    %c0_i32 = arith.constant 0 : i32
    %c0_i32_0 = arith.constant 0 : i32
    %c0_i32_1 = arith.constant 0 : i32
    return %c0_i32, %c0_i32_0 : i32, i32
  }
  func.func @transform_4(%arg0: i32) -> (i32, i32) {
    %c0_i32 = arith.constant 0 : i32
    %c0_i32_0 = arith.constant 0 : i32
    %c0_i32_1 = arith.constant 0 : i32
    return %c0_i32, %c0_i32_0 : i32, i32
  }
  func.func @transform_5(%arg0: i32) -> (i32, i32) {
    %c0_i32 = arith.constant 0 : i32
    %c0_i32_0 = arith.constant 0 : i32
    %c0_i32_1 = arith.constant 0 : i32
    return %c0_i32, %c0_i32_0 : i32, i32
  }
  func.func @transform_6(%arg0: i32) -> (i32, i32) {
    %c0_i32 = arith.constant 0 : i32
    %c0_i32_0 = arith.constant 0 : i32
    return %arg0, %c0_i32 : i32, i32
  }
}

</mosaic_0001>

<bundles_post_ra>
// kernel: tpu_custom_call.1
= control target key start
LH: loop header
LB: loop body
LE: loop exit
PB: predicated region body
PF: predicated region fallthrough
CT: control target
= control target key end

     0   :  { %s2095_s0 = inlined_call_operand.hbm [shape: bf16[16,8,32], index: 0, kind: input, shape index: {}]   ;;  %s2096_s1 = inlined_call_operand.hbm [shape: bf16[16,32], index: 1, kind: input, shape index: {}]   ;;  %s2097_s2 = inlined_call_operand.hbm [shape: bf16[32,32], index: 2, kind: input, shape index: {}]   ;;  %s2098_s3 = inlined_call_operand.hbm [shape: bf16[32,32], index: 3, kind: input, shape index: {}]   ;;  %s2099_s4 = inlined_call_operand.vmem [shape: f32[1,32], index: 4, kind: input, shape index: {}]   ;;  %s2100_s5 = inlined_call_operand.vmem [shape: f32[1,32], index: 5, kind: input, shape index: {}]   ;;  %s2101_s6 = inlined_call_operand.hbm [shape: f32[16,32], index: 6, kind: output, shape index: {}]  }
   0x1   :  { %2108 = sst [smem:[#allocation17_spill]] %s2095_s0 }
   0x2   :  { %2109 = sst [smem:[#allocation18_spill]] %s2097_s2 }
   0x3   :  { %2110 = sst [smem:[#allocation19_spill]] %s2098_s3 }
   0x4   :  { %11 = vsyncpa [#allocation3], 0 }
   0x5   :  { %13 = vsyncpa [#allocation3 + $0x1], 0 }
   0x6   :  { %14 = vsyncpa [#allocation6], 0 }
   0x7   :  { %16 = vsyncpa [#allocation6 + $0x1], 0 }
   0x8   :  { %17 = vsyncpa [#allocation9], 0 }
   0x9   :  { %18 = vsyncpa [#allocation4], 0 }
   0xa   :  { %20 = vsyncpa [#allocation4 + $0x1], 0  ;;  %s1632_s21 = smov 0   ;;  %s1634_s22 = smov 0  }
   0xb   :  { %s1636_s23 = smov 0   ;;  %s1638_s24 = smov 0  }
   0xc LB: > { %s1653_s25 = sadd.s32 4294967295, %s1584_s24   ;;  %s1185_s26 = sadd.s32 4294967294, %s1584_s24   ;;  %s1584_s24 = sphi %s1638_s24, %s2138_s24   ;;  %s1580_s23 = sphi %s1636_s23, %s2137_s23   ;;  %s1576_s22 = sphi %s1634_s22, %s2136_s22   ;;  %s1572_s21 = sphi %s1632_s21, %s2135_s21  }
   0xd   : > { %p46_p0 = scmp.ne.s32.totalorder %s1576_s22, %s1572_s21  ;;  %p2102_p1 = scmp.eq.s32.totalorder %s1653_s25, 0 }
   0xe   : > { %p186_p3 = scmp.eq.s32.totalorder %s1185_s26, 1  ;;  %p1186_p5 = scmp.ge.s32.totalorder %s1584_s24, 1 }
   0xf   : > { %p1662_p4 = por %p2102_p1, %p46_p0  ;;  %p193_p7 = scmp.lt.s32.totalorder %s1584_s24, 3 }
  0x10   : > { %p1667_p6 = por %p186_p3, %p46_p0  ;;  %s1586_s30 = smov [#allocation7]  }
  0x11   : > { %s2111_s27 = scalar_select %p1662_p4, 1, 0 }
  0x12   : > { %s2112_s28 = scalar_select %p1667_p6, 1, 0 }
  0x13   : > { %p1672_p8 = pnand %p1186_p5, %p193_p7  ;;  %s205_s7 = sshll.u32 %s1586_s30, 4  ;;  %s1676_s7 = int_to_ptr.vmem [resolvable:$true] %s205_s7 }
  0x14   : > { %s1587_s9 = smov [#allocation8]   ;;  %s2115_s2 = sld [smem:[#allocation18_spill]] }
  0x15   : > { %s2113_s29 = scalar_select %p1672_p8, 1, 0 }
  0x16   : > { %p1264_p9 = pneg %p1672_p8  ;;  %s218_s10 = sshll.u32 %s1587_s9, 4  ;;  %s1687_s10 = int_to_ptr.vmem [resolvable:$true] %s218_s10 }
  0x18   : > { %p1683_p11 = pnand %p1264_p9, %p2102_p1 }
  0x1a   : > { %s1390_s13 = scalar_lea.hbm %s2115_s2, 256  ;;  %p1392_p13 = pneg %p1683_p11 }
  0x1b   : > { %p1391_p12 = scmp.ne.s32.totalorder %s2115_s2, %s1390_s13  ;;  %p1397_p5 = scmp.lt.u32.totalorder %s1390_s13, %s2115_s2 }
  0x1d   : > { %p1393_p0 = pnand %p1392_p13, %p1391_p12 }
  0x1f   : > { %p1394_p3 = pneg %p1393_p0 }
  0x21   : > { %p1399_p7 = pnand %p1397_p5, %p1394_p3 }
  0x23   : > { %1402 = shalt.err (!%p1399_p7)
}
  0x24   : > { %s1403_s18 = scalar_lea.vmem %s1676_s7, 256  ;;  %p1411_p2 = scmp.lt.s32.totalorder %s1676_s7, %s1676_s7 }
  0x25   : > { %p1404_p9 = scmp.ne.s32.totalorder %s1676_s7, %s1403_s18  ;;  %p1412_p12 = scmp.lt.s32.totalorder %s1403_s18, %s1403_s18 }
  0x27   : > { %p1406_p10 = pnand %p1404_p9, %p1392_p13  ;;  %p1413_p0 = por %p1412_p12, %p1411_p2 }
  0x29   : > { %p1407_p1 = pneg %p1406_p10 }
  0x2b   : > { %p1414_p6 = pnand %p1413_p0, %p1407_p1 }
  0x2d   : > { %1417 = shalt.err (!%p1414_p6)
}
  0x2e   : > { %s2103_s19 = smov 64   ;;  %s2104_s20 = smov 4  }
  0x2f   : > { %1267 = dma.hbm_to_vmem [thread:$0]  (!%p1683_p11), %s2115_s2, 256, %s1676_s7, [#allocation6], %s2103_s19, %s2103_s19, %s2104_s20  }
  0x30   : > { %s2116_s3 = sld [smem:[#allocation19_spill]] }
  0x36   : > { %s1418_s12 = scalar_lea.hbm %s2116_s3, 256 }
  0x37   : > { %p1419_p1 = scmp.ne.s32.totalorder %s2116_s3, %s1418_s12  ;;  %p1425_p10 = scmp.lt.u32.totalorder %s1418_s12, %s2116_s3 }
  0x39   : > { %p1421_p2 = pnand %p1419_p1, %p1392_p13 }
  0x3b   : > { %p1422_p6 = pneg %p1421_p2 }
  0x3d   : > { %p1427_p3 = pnand %p1425_p10, %p1422_p6 }
  0x3f   : > { %1430 = shalt.err (!%p1427_p3)
}
  0x40   : > { %s1431_s7 = scalar_lea.vmem %s1687_s10, 256  ;;  %p1439_p12 = scmp.lt.s32.totalorder %s1687_s10, %s1687_s10 }
  0x41   : > { %p1432_p5 = scmp.ne.s32.totalorder %s1687_s10, %s1431_s7  ;;  %p1440_p0 = scmp.lt.s32.totalorder %s1431_s7, %s1431_s7 }
  0x43   : > { %p1434_p7 = pnand %p1432_p5, %p1392_p13  ;;  %p1441_p1 = por %p1440_p0, %p1439_p12 }
  0x45   : > { %p1435_p9 = pneg %p1434_p7 }
  0x47   : > { %p1442_p2 = pnand %p1441_p1, %p1435_p9 }
  0x49   : > { %1445 = shalt.err (!%p1442_p2)
}
  0x4a   : > { %1270 = dma.hbm_to_vmem [thread:$0]  (!%p1683_p11), %s2116_s3, 256, %s1687_s10, [#allocation9], %s2103_s19, %s2103_s19, %s2104_s20  }
  0x4b   : > { %s1748_s8 = sadd.s32 1, %s1584_s24   ;;  %s33_s26 = sadd.s32 1, %s1580_s23 }
  0x4c   : > { %s30_s30 = ssub.s32 %s1584_s24, %s1748_s8  ;;  %p40_p13 = scmp.ne.s32.totalorder %s1580_s23, %s1576_s22 }
  0x4d   : > { %p31_p6 = scmp.eq.s32.totalorder %s30_s30, 0  ;;  %p41_p10 = scmp.eq.s32.totalorder %s1584_s24, 0 }
  0x4e   : > { %p2117_p3 = scmp.eq.s32.totalorder %s1653_s25, 1  ;;  %p1284_p7 = scmp.lt.s32.totalorder %s1584_s24, 2 }
  0x4f   : > { %s1764_s11 = scalar_select %p31_p6, %s1580_s23, %s33_s26  }
  0x50   : > { %p1758_p5 = por %p2117_p3, %p40_p13  ;;  %p42_p9 = por %p41_p10, %p40_p13 }
  0x51   : > { %2119 = sst [smem:[#allocation16_spill]] %s1764_s11  ;;  %s1767_s12 = sand.u32 1, %s1580_s23  }
  0x52   : > { %s2118_s9 = scalar_select %p1758_p5, 1, 0 }
  0x53   : > { %s1190_s10 = sshll.u32 %s1767_s12, 5  ;;  %s1220_s13 = sshll.u32 %s1584_s24, 9 }
  0x54   : > { %s2120_s0 = sld [smem:[#allocation17_spill]]  ;;  %s242_s7 = scalar_lea.vmem [#allocation2], %s1190_s10 }
  0x55   : > { %s249_s17 = sshll.u32 %s242_s7, 4  ;;  %p1778_p11 = pnand %p1284_p7, %p42_p9  ;;  %s1776_s17 = int_to_ptr.vmem [resolvable:$true] %s249_s17 }
  0x56   : > { %s1193_s30 = sshll.u32 %s1767_s12, 2  ;;  %s239_s19 = scalar_lea.sflag [#allocation3], %s1767_s12 }
  0x57   : > { %p1448_p0 = pneg %p1778_p11 }
  0x5a   : > { %s1774_s16 = scalar_lea.hbm %s2120_s0, %s1220_s13  ;;  %s1451_s15 = scalar_lea.hbm %s2120_s0, 1024 }
  0x5b   : > { %s1446_s14 = scalar_lea.hbm %s1774_s16, 512  ;;  %p1452_p13 = scmp.lt.u32.totalorder %s1774_s16, %s2120_s0 }
  0x5c   : > { %p1447_p12 = scmp.ne.s32.totalorder %s1774_s16, %s1446_s14  ;;  %p1453_p6 = scmp.lt.u32.totalorder %s1451_s15, %s1446_s14 }
  0x5d   : > { %p1455_p3 = scmp.lt.u32.totalorder %s1446_s14, %s1774_s16 }
  0x5e   : > { %p1449_p1 = pnand %p1448_p0, %p1447_p12  ;;  %p1454_p10 = por %p1453_p6, %p1452_p13 }
  0x60   : > { %p1450_p2 = pneg %p1449_p1  ;;  %p1456_p7 = por %p1455_p3, %p1454_p10 }
  0x62   : > { %p1457_p9 = pnand %p1456_p7, %p1450_p2 }
  0x64   : > { %1460 = shalt.err (!%p1457_p9)
}
  0x65   : > { %s1461_s26 = scalar_lea.vmem %s1776_s17, 512  ;;  %s1590_s10 = smov [#allocation2]  }
  0x66   : > { %p1462_p12 = scmp.ne.s32.totalorder %s1776_s17, %s1461_s26  ;;  %s1466_s13 = sshll.u32 %s1590_s10, 4  ;;  %s1467_s13 = int_to_ptr.vmem [resolvable:$false] %s1466_s13 }
  0x67   : > { %s1468_s20 = scalar_lea.vmem %s1467_s13, 1024  ;;  %p1469_p4 = scmp.lt.s32.totalorder %s1776_s17, %s1467_s13 }
  0x68   : > { %p1464_p1 = pnand %p1462_p12, %p1448_p0  ;;  %p1470_p13 = scmp.lt.s32.totalorder %s1468_s20, %s1461_s26 }
  0x6a   : > { %p1465_p5 = pneg %p1464_p1  ;;  %p1471_p6 = por %p1470_p13, %p1469_p4 }
  0x6c   : > { %p1472_p10 = pnand %p1471_p6, %p1465_p5 }
  0x6e   : > { %1475 = shalt.err (!%p1472_p10)
}
  0x6f   : > { %s2122_s14 = smov 4   ;;  %s2123_s15 = smov 64  }
  0x70   : > { %1274 = dma.hbm_to_vmem [thread:$0]  (!%p1778_p11), %s1774_s16, 512, %s1776_s17, %s239_s19, %s2123_s15, %s2123_s15, %s2122_s14  }
  0x71   : > { %s1194_s7 = sshll.u32 %s1584_s24, 6  ;;  %s263_s20 = scalar_lea.vmem [#allocation5], %s1193_s30 }
  0x72   : > { %s1819_s13 = scalar_lea.hbm %s2096_s1, %s1194_s7  ;;  %s270_s0 = sshll.u32 %s263_s20, 4  ;;  %s271_s0 = int_to_ptr.vmem [resolvable:$true] %s270_s0 }
  0x73   : > { %s2124_s2 = sand.u32 1, %s1584_s24   ;;  %s1476_s11 = scalar_lea.hbm %s1819_s13, 64 }
  0x74   : > { %s260_s3 = scalar_lea.sflag [#allocation6], %s2124_s2  ;;  %p1477_p4 = scmp.ne.s32.totalorder %s1819_s13, %s1476_s11 }
  0x75   : > { %s1481_s17 = scalar_lea.hbm %s2096_s1, 128  ;;  %p1482_p3 = scmp.lt.u32.totalorder %s1819_s13, %s2096_s1 }
  0x76   : > { %p1479_p5 = pnand %p1477_p4, %p1448_p0  ;;  %p1483_p7 = scmp.lt.u32.totalorder %s1481_s17, %s1476_s11 }
  0x77   : > { %p1485_p12 = scmp.lt.u32.totalorder %s1476_s11, %s1819_s13 }
  0x78   : > { %p1480_p2 = pneg %p1479_p5  ;;  %p1484_p9 = por %p1483_p7, %p1482_p3 }
  0x7a   : > { %p1486_p1 = por %p1485_p12, %p1484_p9 }
  0x7c   : > { %p1487_p13 = pnand %p1486_p1, %p1480_p2 }
  0x7e   : > { %1490 = shalt.err (!%p1487_p13)
}
  0x7f   : > { %s1491_s2 = scalar_lea.vmem %s271_s0, 64  ;;  %s1591_s30 = smov [#allocation5]  }
  0x80   : > { %p1492_p6 = scmp.ne.s32.totalorder %s271_s0, %s1491_s2  ;;  %s1496_s15 = sshll.u32 %s1591_s30, 4  ;;  %s1497_s15 = int_to_ptr.vmem [resolvable:$false] %s1496_s15 }
  0x81   : > { %s1498_s7 = scalar_lea.vmem %s1497_s15, 128  ;;  %p1499_p5 = scmp.lt.s32.totalorder %s271_s0, %s1497_s15 }
  0x82   : > { %p1494_p10 = pnand %p1492_p6, %p1448_p0  ;;  %p1500_p8 = scmp.lt.s32.totalorder %s1498_s7, %s1491_s2 }
  0x84   : > { %p1495_p4 = pneg %p1494_p10  ;;  %p1501_p3 = por %p1500_p8, %p1499_p5 }
  0x86   : > { %p1502_p7 = pnand %p1501_p3, %p1495_p4 }
  0x88   : > { %1505 = shalt.err (!%p1502_p7)
}
  0x89   : > { %1277 = dma.hbm_to_vmem [thread:$0]  (!%p1778_p11), %s1819_s13, 64, %s271_s0, %s260_s3  }
  0x8a   : > { %p2125_p2 = scmp.ne.s32.totalorder %s2113_s29, 0 }
  0x8b   : > { %s1847_s11 = sand.u32 (!%p2125_p2), 1, %s1576_s22   ;;  %p2126_p8 = scmp.ne.s32.totalorder (!%p2125_p2), %s2111_s27, 0 }
  0x8c   : > { %279 = sbr.rel (%p2125_p2) target bundleno = 1221 (0x4c5), region = 44  ;;  %s1196_s10 = sshll.u32 (!%p2125_p2), %s1847_s11, 5 }
  0x8d   : > { %s282_s26 = scalar_lea.sflag (!%p2125_p2), [#allocation3], %s1847_s11  ;;  %s1851_s20 = scalar_lea.vmem (!%p2125_p2), [#allocation2], %s1196_s10 }
  0x93   : > { %1551 = dma.done.wait (%p2126_p8), %s282_s26, 512  }
  0x94   : > { %1553 = vsyncadd (%p2126_p8), %s282_s26, 4294966784  ;;  %s290_s0 = sand.u32 1, %s1653_s25   ;;  %s1197_s3 = sshll.u32 %s1847_s11, 2 }
  0x95   : > { %s291_s29 = scalar_lea.sflag [#allocation6], %s290_s0  ;;  %s294_s18 = scalar_lea.vmem [#allocation5], %s1197_s3 }
  0x96   : > { %1555 = dma.done.wait (%p2126_p8), %s291_s29, 64  }
  0x97   : > { %1557 = vsyncadd (%p2126_p8), %s291_s29, 4294967232  ;;  %p2127_p11 = scmp.eq.s32.totalorder %s1653_s25, 0 }
  0x99   : > { %1559 = dma.done.wait (%p2127_p11), [#allocation6], 256   ;;  %p2128_p0 = pmov %p2127_p11 }
  0x9b   : > { %1561 = vsyncadd (%p2128_p0), [#allocation6], 4294967040  ;;  %p2129_p9 = pmov %p2128_p0 }
  0x9c   : > { %p2130_p12 = pmov %p2128_p0 }
  0x9d   : > { %1563 = dma.done.wait (%p2129_p9), [#allocation9], 256  }
  0x9e   : > { %1565 = vsyncadd (%p2130_p12), [#allocation9], 4294967040  ;;  %v1592_v0 = vmov 0.0   ;;  %vm1593_vm0 = vmmov 0   ;;  %v1330_v1 = vld [vmem:[#allocation7] sm:$0xff]   ;;  %v1331_v2 = vld [vmem:[#allocation8] sm:$0xff]   ;;  %v532_v12 = vlaneseq }
  0x9f   : > { %1242 = vmatprep.subr.bf16.mxu1 %v1592_v0  ;;  %1246 = vmatprep.mubr.msk.bf16.mxu1 %vm1593_vm0, %v1592_v0  ;;  %v1332_v3 = vld [vmem:[#allocation7 + $0x8] sm:$0xff]   ;;  %v1333_v4 = vld [vmem:[#allocation8 + $0x8] sm:$0xff]   ;;  %v1875_v6 = vld [vmem:[%s1851_s20 + $0x8] sm:$0xff]   ;;  %vm383_vm1 = vcmask 261120   ;;  %v1594_v10 = vmov 1966171168  }
  0xa0   : > { %1230 = vmatprep.subr.bf16.mxu0 %v1330_v1  ;;  %1243 = vmatpush3.bf16.msra.mxu1 %v1331_v2  ;;  %v1872_v5 = vld [vmem:[%s1851_s20] sm:$0xff]   ;;  %v1878_v7 = vld [vmem:[%s1851_s20 + $0x10] sm:$0xff]   ;;  %v1888_v9 = vld [vmem:[%s1851_s20 + $0x18] sm:$0xff]   ;;  %v530_v11 = vunpack.c.l.s4 %v1594_v10  ;;  %v1893_v14 = vshrl.u32 %v532_v12, 7  ;;  %vm714_vm2 = vcmask 1041409   ;;  %vm716_vm3 = vcmask 1042434  }
  0xa1   : > { %1231 = vmatpush3.bf16.msra.mxu0 %v1330_v1  ;;  %1244 = vmatprep.subr.bf16.mxu1 %v1592_v0  ;;  %v346_v8 = vld [vmem:[%s294_s18] sm:$0xf]  ;;  %vm718_vm4 = vcmask 1043459   ;;  %vm720_vm5 = vcmask 1044484   ;;  %vm722_vm6 = vcmask 1045509   ;;  %vm724_vm7 = vcmask 1046534  }
  0xa2   : > { %1232 = vmatprep.subr.bf16.mxu0 %v1332_v3  ;;  %1234 = vmatprep.mubr.msk.bf16.mxu0 %vm383_vm1, %v1872_v5  ;;  %v531_v13 = vunpack.c.0.s8 %v530_v11  ;;  %v1211_v15 = vld [vmem:[%s2099_s4] ss:$0 sm:$0xff]  ;;  %v1900_v27 = vsub.s32 0, %v1893_v14  ;;  %vm726_vm8 = vcmask 1047559   ;;  %vm729_vm9 = vcmask 64512   ;;  %s1200_s17 = sshll.u32 %s1847_s11, 3 }
  0xa3   : > { %v1215_v60 = vld [vmem:[%s2100_s5] ss:$0 sm:$0xff]  ;;  %s1217_s12 = sshll.u32 %s1653_s25, 7  ;;  %s335_s14 = scalar_lea.vmem [#allocation10], %s1200_s17 }
  0xa4   : > { %1245 = vmatpush3.bf16.msra.mxu1 %v1333_v4  ;;  %v534_v16 = vsub.s32 %v531_v13, %v1893_v14  ;;  %s1073_s2 = sshll.u32 %s335_s14, 4  ;;  %s2049_s7 = scalar_lea.hbm %s2101_s6, %s1217_s12  ;;  %s2051_s2 = int_to_ptr.vmem [resolvable:$true] %s1073_s2 }
  0xa5   : > { %1233 = vmatpush3.bf16.msra.mxu0 %v1332_v3  ;;  %s1060_s25 = scalar_lea.sflag [#allocation4], %s1847_s11  ;;  %s1506_s10 = scalar_lea.vmem %s2051_s2, 128 }
  0xa6   : > { %p1507_p1 = scmp.ne.s32.totalorder %s2051_s2, %s1506_s10  ;;  %p2131_p13 = scmp.ne.s32.totalorder %s2118_s9, 0 }
  0xa7   : > { %1247 = vmatmul.mubr.msk.bf16.vlgmr.msra.gmra.mrb[0].mxu1 %vm383_vm1, %v346_v8  ;;  %s1596_s26 = smov [#allocation10]  }
  0xa8   : > { %1235 = vmatmul.mubr.msk.bf16.vlgmr.msra.gmra.mrb[0].mxu0 %vm383_vm1, %v1875_v6  ;;  %p1508_p6 = pnand %p1507_p1, %p2131_p13  ;;  %s1510_s20 = sshll.u32 %s1596_s26, 4  ;;  %s1511_s20 = int_to_ptr.vmem [resolvable:$false] %s1510_s20 }
  0xa9   : > { %1238 = vmatprep.mubr.msk.bf16.mxu0 %vm383_vm1, %v1878_v7  ;;  %s1512_s0 = scalar_lea.vmem %s1511_s20, 256  ;;  %p1513_p4 = scmp.lt.s32.totalorder %s2051_s2, %s1511_s20 }
  0xaa   : > { %p1509_p10 = pneg %p1508_p6  ;;  %p1514_p5 = scmp.lt.s32.totalorder %s1512_s0, %s1506_s10 }
  0xac   : > { %p1515_p3 = por %p1514_p5, %p1513_p4 }
  0xae   : > { %p1516_p7 = pnand %p1515_p3, %p1509_p10 }
  0xb0   : > { %1239 = vmatmul.mubr.msk.bf16.gmra.mrb[4].mxu0 %vm383_vm1, %v1888_v9 }
 0x17a   : > { %v521_v17 = vpop.f32.mrb[0].mxu1 }
 0x17b   : > { %v1236_v18 = vpop.f32.mrb[0].mxu0  ;;  %v522_v19 = vadd.f32 %v1211_v15, %v521_v17  ;;  %v1248_v20 = vpop.f32.mrb[1].mxu1 }
 0x17c   : > { %v430_v21 = vpop.f32.mrb[1].mxu0  ;;  %v524_v22 = vpop.f32.mrb[2].mxu1 }
 0x17d   : > { %v1237_v23 = vpop.f32.mrb[2].mxu0  ;;  %v528_v24 = vcombine.high %v522_v19, %v522_v19  ;;  %v535_v25 = vrot.slane %v522_v19, %v534_v16  ;;  %v1249_v26 = vpop.f32.mrb[3].mxu1 }
 0x17e   : > { %v433_v28 = vpop.f32.mrb[3].mxu0 }
 0x17f   : > { %v542_v29 = vrot.slane %v528_v24, %v534_v16  ;;  %v543_v30 = vcombine.high %v535_v25, %v535_v25  ;;  %v551_v31 = vrot.slane %v535_v25, %v534_v16 }
 0x181   : > { %v544_v32 = vcombine.high %v542_v29, %v542_v29  ;;  %v573_v33 = vcombine.high %v551_v31, %v551_v31  ;;  %v580_v34 = vrot.slane %v551_v31, %v1900_v27  ;;  %v565_v35 = vrot.slane %v543_v30, %v534_v16 }
 0x182   : > { %v558_v37 = vrot.slane %v542_v29, %v534_v16 }
 0x183   : > { %v1240_v36 = vpop.f32.mrb[4].mxu0  ;;  %v588_v38 = vrot.slane %v573_v33, %v1900_v27  ;;  %v617_v39 = vadd.f32 %v580_v34, %v430_v21  ;;  %v575_v40 = vcombine.high %v565_v35, %v565_v35  ;;  %v584_v41 = vrot.slane %v565_v35, %v1900_v27 }
 0x184   : > { %v446_v42 = vpop.f32.mrb[5].mxu0  ;;  %v574_v43 = vcombine.high %v558_v37, %v558_v37  ;;  %v596_v44 = vrot.slane %v558_v37, %v1900_v27  ;;  %v572_v46 = vrot.slane %v544_v32, %v534_v16 }
 0x185   : > { %v1241_v45 = vpop.f32.mrb[6].mxu0  ;;  %v619_v47 = vadd.f32 %v1236_v18, %v588_v38  ;;  %1342 = vtanh.f32 %v617_v39  ;;  %v592_v48 = vrot.slane %v575_v40, %v1900_v27  ;;  %v618_v49 = vadd.f32 %v584_v41, %v433_v28 }
 0x186   : > { %v449_v50 = vpop.f32.mrb[7].mxu0  ;;  %v604_v51 = vrot.slane %v574_v43, %v1900_v27  ;;  %v621_v52 = vadd.f32 %v596_v44, %v446_v42  ;;  %v576_v53 = vcombine.high %v572_v46, %v572_v46  ;;  %v600_v54 = vrot.slane %v572_v46, %v1900_v27 }
 0x187   : > { %1344 = vtanh.f32 %v619_v47  ;;  %v620_v55 = vadd.f32 %v1237_v23, %v592_v48  ;;  %v681_v28 = vand.u32 127, %v532_v12 }
 0x188   : > { %1346 = vtanh.f32 %v618_v49  ;;  %v623_v56 = vadd.f32 %v1240_v36, %v604_v51  ;;  %v608_v57 = vrot.slane %v576_v53, %v1900_v27  ;;  %v622_v58 = vadd.f32 %v600_v54, %v449_v50 }
 0x189   : > { %1348 = vtanh.f32 %v620_v55  ;;  %v1923_v30 = vsub.s32 %v681_v28, %v1893_v14  ;;  %v1595_v53 = vmov 0   ;;  %v740_v54 = vsub.s32 1, %v1893_v14 }
 0x18a   : > { %v624_v59 = vadd.f32 %v1241_v45, %v608_v57  ;;  %1350 = vtanh.f32 %v621_v52  ;;  %1329 = vset.pattern.permute.xlu0 %v1595_v53  ;;  %1328 = vset.pattern.permute.xlu1 %v1595_v53  ;;  %v744_v55 = vsub.s32 2, %v1893_v14 }
 0x18b   : > { %1352 = vtanh.f32 %v623_v56  ;;  %v748_v56 = vsub.s32 3, %v1893_v14 }
 0x18c   : > { %1354 = vtanh.f32 %v622_v58 }
 0x18d   : > { %1356 = vtanh.f32 %v624_v59 }
 0x18f   : > { %v1343_v61 = vpop.eup %1342 }
 0x190   : > { %v640_v62 = vmul.f32 %v1343_v61, %v1215_v60  ;;  %v752_v61 = vsub.s32 4, %v1893_v14 }
 0x191   : > { %v1345_v63 = vpop.eup %1344 }
 0x192   : > { %v1347_v0 = vpop.eup %1346  ;;  %v648_v1 = vsel %vm383_vm1, %v640_v62, 0.0  ;;  %v642_v2 = vmul.f32 %v1345_v63, %v1215_v60 }
 0x193   : > { %v1349_v3 = vpop.eup %1348  ;;  %649 = vadd.xlane.f32.xlu0 %v648_v1  ;;  %v641_v4 = vmul.f32 %v1347_v0, %v1215_v60 }
 0x194   : > { %v654_v8 = vsel %vm383_vm1, %v642_v2, 0.0  ;;  %v643_v10 = vmul.f32 %v1349_v3, %v1215_v60  ;;  %v1351_v11 = vpop.eup %1350 }
 0x195   : > { %655 = vadd.xlane.f32.xlu1 %v654_v8  ;;  %v1353_v13 = vpop.eup %1352  ;;  %v651_v15 = vsel %vm383_vm1, %v641_v4, 0.0  ;;  %v644_v16 = vmul.f32 %v1351_v11, %v1215_v60  ;;  %v756_v4 = vsub.s32 5, %v1893_v14 }
 0x196   : > { %v1355_v17 = vpop.eup %1354  ;;  %v657_v18 = vsel %vm383_vm1, %v643_v10, 0.0  ;;  %v646_v22 = vmul.f32 %v1353_v13, %v1215_v60  ;;  %v760_v13 = vsub.s32 6, %v1893_v14 }
 0x197   : > { %652 = vadd.xlane.f32.xlu0 %v651_v15  ;;  %v645_v19 = vmul.f32 %v1355_v17, %v1215_v60  ;;  %v1357_v20 = vpop.eup %1356  ;;  %v660_v21 = vsel %vm383_vm1, %v644_v16, 0.0 }
 0x198   : > { %v647_v24 = vmul.f32 %v1357_v20, %v1215_v60  ;;  %v666_v25 = vsel %vm383_vm1, %v646_v22, 0.0 }
 0x199   : > { %658 = vadd.xlane.f32.xlu1 %v657_v18  ;;  %v663_v23 = vsel %vm383_vm1, %v645_v19, 0.0  ;;  %v764_v18 = vsub.s32 7, %v1893_v14 }
 0x19a   : > { %v669_v26 = vsel %vm383_vm1, %v647_v24, 0.0 }
 0x19b   : > { %661 = vadd.xlane.f32.xlu0 %v660_v21 }
 0x19d   : > { %664 = vadd.xlane.f32.xlu1 %v663_v23 }
 0x19f   : > { %667 = vadd.xlane.f32.xlu0 %v666_v25 }
 0x1a1   : > { %670 = vadd.xlane.f32.xlu1 %v669_v26 }
 0x220   : > { %v650_v29 = vpop.xlane.xlu0 %649 }
 0x221   : > { %v685_v33 = vrot.slane %v650_v29, %v1923_v30 }
 0x222   : > { %v656_v31 = vpop.xlane.xlu1 %655 }
 0x223   : > { %v693_v35 = vrot.slane %v656_v31, %v1923_v30 }
 0x224   : > { %v653_v32 = vpop.xlane.xlu0 %652 }
 0x225   : > { %v689_v34 = vrot.slane %v653_v32, %v1923_v30 }
 0x226   : > { %v659_v36 = vpop.xlane.xlu1 %658 }
 0x227   : > { %v715_v37 = vsel %vm714_vm2, %v689_v34, %v685_v33  ;;  %v697_v12 = vrot.slane %v659_v36, %v1923_v30 }
 0x228   : > { %v717_v38 = vsel %vm716_vm3, %v693_v35, %v715_v37  ;;  %v662_v39 = vpop.xlane.xlu0 %661 }
 0x229   : > { %v719_v40 = vsel %vm718_vm4, %v697_v12, %v717_v38  ;;  %v701_v41 = vrot.slane %v662_v39, %v1923_v30 }
 0x22a   : > { %v665_v42 = vpop.xlane.xlu1 %664 }
 0x22b   : > { %v721_v43 = vsel %vm720_vm5, %v701_v41, %v719_v40  ;;  %v705_v44 = vrot.slane %v665_v42, %v1923_v30 }
 0x22c   : > { %v668_v45 = vpop.xlane.xlu0 %667 }
 0x22d   : > { %v709_v46 = vrot.slane %v668_v45, %v1923_v30  ;;  %v723_v47 = vsel %vm722_vm6, %v705_v44, %v721_v43 }
 0x22e   : > { %v671_v48 = vpop.xlane.xlu1 %670 }
 0x22f   : > { %v713_v49 = vrot.slane %v671_v48, %v1923_v30  ;;  %v725_v50 = vsel %vm724_vm7, %v709_v46, %v723_v47 }
 0x231   : > { %v727_v51 = vsel %vm726_vm8, %v713_v49, %v725_v50 }
 0x232   : > { %v730_v52 = vsel %vm729_vm9, %v727_v51, -inf }
 0x233   : > { %731 = vmax.xlane.f32.xlu0 %v730_v52 }
 0x2c0   : > { %v732_v57 = vpop.xlane.xlu0 %731 }
 0x2c1   : > { %v737_v58 = vrot.slane %v732_v57, %v1900_v27  ;;  %v741_v59 = vrot.slane %v732_v57, %v740_v54  ;;  %v745_v60 = vrot.slane %v732_v57, %v744_v55  ;;  %v749_v62 = vrot.slane %v732_v57, %v748_v56 }
 0x2c2   : > { %v753_v8 = vrot.slane %v732_v57, %v752_v61  ;;  %v757_v15 = vrot.slane %v732_v57, %v756_v4  ;;  %v761_v19 = vrot.slane %v732_v57, %v760_v13  ;;  %v765_v24 = vrot.slane %v732_v57, %v764_v18 }
 0x2c3   : > { %v774_v63 = vsub.f32 %v650_v29, %v737_v58  ;;  %v775_v0 = vsub.f32 %v653_v32, %v741_v59  ;;  %v776_v1 = vsub.f32 %v656_v31, %v745_v60  ;;  %v777_v10 = vsub.f32 %v659_v36, %v749_v62 }
 0x2c4   : > { %v778_v16 = vsub.f32 %v662_v39, %v753_v8  ;;  %v779_v20 = vsub.f32 %v665_v42, %v757_v15  ;;  %v780_v25 = vsub.f32 %v668_v45, %v761_v19  ;;  %v781_v29 = vsub.f32 %v671_v48, %v765_v24 }
 0x2c5   : > { %v782_v2 = vmul.f32 1.442695, %v774_v63  ;;  %v784_v3 = vmul.f32 1.442695, %v775_v0  ;;  %v786_v11 = vmul.f32 1.442695, %v776_v1 }
 0x2c6   : > { %v788_v17 = vmul.f32 1.442695, %v777_v10  ;;  %v790_v21 = vmul.f32 1.442695, %v778_v16  ;;  %v792_v26 = vmul.f32 1.442695, %v779_v20 }
 0x2c7   : > { %1358 = vpow2.f32 %v782_v2  ;;  %v794_v31 = vmul.f32 1.442695, %v780_v25  ;;  %v796_v33 = vmul.f32 1.442695, %v781_v29  ;;  %v930_v29 = vunpack.c.l.bf16 %v1872_v5 }
 0x2c8   : > { %1360 = vpow2.f32 %v784_v3 }
 0x2c9   : > { %1362 = vpow2.f32 %v786_v11 }
 0x2ca   : > { %1364 = vpow2.f32 %v788_v17 }
 0x2cb   : > { %1366 = vpow2.f32 %v790_v21 }
 0x2cc   : > { %1368 = vpow2.f32 %v792_v26  ;;  %v931_v26 = vunpack.c.h.bf16 %v1872_v5 }
 0x2cd   : > { %1370 = vpow2.f32 %v794_v31  ;;  %v932_v31 = vunpack.c.l.bf16 %v1875_v6 }
 0x2ce   : > { %1372 = vpow2.f32 %v796_v33 }
 0x2d1   : > { %v1359_v22 = vpop.eup %1358 }
 0x2d2   : > { %v1961_v23 = vpop.eup %1360  ;;  %807 = vperm.xlu1 %1328, %v1359_v22  }
 0x2d3   : > { %810 = vperm.xlu0 %1329, %v1961_v23   ;;  %v1966_v28 = vpop.eup %1362 }
 0x2d4   : > { %v1969_v32 = vpop.eup %1364 }
 0x2d5   : > { %v1972_v34 = vpop.eup %1366 }
 0x2d6   : > { %813 = vperm.xlu1 %1328, %v1966_v28   ;;  %v1975_v35 = vpop.eup %1368 }
 0x2d7   : > { %v1978_v36 = vpop.eup %1370 }
 0x2d8   : > { %v1981_v37 = vpop.eup %1372 }
 0x2da   : > { %816 = vperm.xlu1 %1328, %v1969_v32  }
 0x2de   : > { %819 = vperm.xlu1 %1328, %v1972_v34  }
 0x2e2   : > { %822 = vperm.xlu1 %1328, %v1975_v35  }
 0x2e6   : > { %825 = vperm.xlu1 %1328, %v1978_v36  }
 0x2ea   : > { %828 = vperm.xlu1 %1328, %v1981_v37  }
 0x351   : > { %v808_v12 = vpop.permute.xlu1 %807 }
 0x352   : > { %v811_v41 = vpop.permute.xlu0 %810  ;;  %v833_v44 = vrot.slane %v808_v12, %v1923_v30  ;;  %v933_v12 = vunpack.c.h.bf16 %v1875_v6  ;;  %v935_v6 = vunpack.c.h.bf16 %v1878_v7 }
 0x353   : > { %v837_v43 = vrot.slane %v811_v41, %v1923_v30  ;;  %v934_v41 = vunpack.c.l.bf16 %v1878_v7 }
 0x355   : > { %v814_v38 = vpop.permute.xlu1 %813  ;;  %v862_v49 = vsel %vm714_vm2, %v837_v43, %v833_v44 }
 0x356   : > { %v841_v45 = vrot.slane %v814_v38, %v1923_v30 }
 0x358   : > { %v863_v51 = vsel %vm716_vm3, %v841_v45, %v862_v49 }
 0x359   : > { %v817_v39 = vpop.permute.xlu1 %816 }
 0x35a   : > { %v845_v46 = vrot.slane %v817_v39, %v1923_v30 }
 0x35c   : > { %v864_v53 = vsel %vm718_vm4, %v845_v46, %v863_v51 }
 0x35d   : > { %v820_v40 = vpop.permute.xlu1 %819 }
 0x35e   : > { %v849_v47 = vrot.slane %v820_v40, %v1923_v30 }
 0x360   : > { %v865_v57 = vsel %vm720_vm5, %v849_v47, %v864_v53 }
 0x361   : > { %v823_v42 = vpop.permute.xlu1 %822 }
 0x362   : > { %v853_v50 = vrot.slane %v823_v42, %v1923_v30 }
 0x364   : > { %v866_v59 = vsel %vm722_vm6, %v853_v50, %v865_v57 }
 0x365   : > { %v826_v48 = vpop.permute.xlu1 %825 }
 0x366   : > { %v857_v52 = vrot.slane %v826_v48, %v1923_v30 }
 0x368   : > { %v867_v62 = vsel %vm724_vm7, %v857_v52, %v866_v59  ;;  %v936_v59 = vunpack.c.l.bf16 %v1888_v9 }
 0x369   : > { %v829_v58 = vpop.permute.xlu1 %828 }
 0x36a   : > { %v861_v60 = vrot.slane %v829_v58, %v1923_v30 }
 0x36c   : > { %v868_v63 = vsel %vm726_vm8, %v861_v60, %v867_v62 }
 0x36d   : > { %v870_v0 = vsel %vm729_vm9, %v868_v63, 0.0 }
 0x36e   : > { %871 = vadd.xlane.f32.xlu1 %v870_v0 }
 0x3fb   : > { %v872_v1 = vpop.xlane.xlu1 %871 }
 0x3fc   : > { %v877_v2 = vrot.slane %v872_v1, %v1900_v27  ;;  %v881_v3 = vrot.slane %v872_v1, %v740_v54  ;;  %v885_v8 = vrot.slane %v872_v1, %v744_v55  ;;  %v889_v30 = vrot.slane %v872_v1, %v748_v56 }
 0x3fd   : > { %v893_v11 = vrot.slane %v872_v1, %v752_v61  ;;  %v897_v27 = vrot.slane %v872_v1, %v756_v4  ;;  %v901_v55 = vrot.slane %v872_v1, %v760_v13  ;;  %v905_v61 = vrot.slane %v872_v1, %v764_v18 }
 0x3fe   : > { %1374 = vrcp.f32 %v877_v2 }
 0x3ff   : > { %1376 = vrcp.f32 %v881_v3 }
 0x400   : > { %1378 = vrcp.f32 %v885_v8 }
 0x401   : > { %1380 = vrcp.f32 %v889_v30 }
 0x402   : > { %1382 = vrcp.f32 %v893_v11 }
 0x403   : > { %1384 = vrcp.f32 %v897_v27 }
 0x404   : > { %1386 = vrcp.f32 %v901_v55 }
 0x405   : > { %1388 = vrcp.f32 %v905_v61 }
 0x408   : > { %v1375_v10 = vpop.eup %1374 }
 0x409   : > { %v915_v15 = vmul.f32 %v1375_v10, %v1359_v22  ;;  %v1377_v16 = vpop.eup %1376  ;;  %v937_v10 = vunpack.c.h.bf16 %v1888_v9 }
 0x40a   : > { %v917_v54 = vmul.f32 %v1377_v16, %v1961_v23  ;;  %v1379_v17 = vpop.eup %1378 }
 0x40b   : > { %940 = vperm.xlu0 %1329, %v915_v15   ;;  %v919_v56 = vmul.f32 %v1379_v17, %v1966_v28  ;;  %v1381_v19 = vpop.eup %1380 }
 0x40c   : > { %v921_v20 = vmul.f32 %v1381_v19, %v1969_v32  ;;  %v1383_v21 = vpop.eup %1382 }
 0x40d   : > { %v923_v4 = vmul.f32 %v1383_v21, %v1972_v34  ;;  %v1385_v22 = vpop.eup %1384 }
 0x40e   : > { %v925_v23 = vmul.f32 %v1385_v22, %v1975_v35  ;;  %v1387_v13 = vpop.eup %1386 }
 0x40f   : > { %945 = vperm.xlu0 %1329, %v917_v54   ;;  %v927_v24 = vmul.f32 %v1387_v13, %v1978_v36  ;;  %v1389_v25 = vpop.eup %1388 }
 0x410   : > { %v929_v14 = vmul.f32 %v1389_v25, %v1981_v37 }
 0x413   : > { %950 = vperm.xlu0 %1329, %v919_v56  }
 0x417   : > { %955 = vperm.xlu0 %1329, %v921_v20  }
 0x41b   : > { %960 = vperm.xlu0 %1329, %v923_v4  }
 0x41f   : > { %965 = vperm.xlu0 %1329, %v925_v23  }
 0x423   : > { %970 = vperm.xlu0 %1329, %v927_v24  }
 0x427   : > { %975 = vperm.xlu0 %1329, %v929_v14  }
 0x48a   : > { %v941_v18 = vpop.permute.xlu0 %940 }
 0x48b   : > { %v978_v34 = vmul.f32 %v941_v18, %v930_v29 }
 0x48d   : > { %v986_v39 = vsel %vm383_vm1, %v978_v34, 0.0 }
 0x48e   : > { %v946_v28 = vpop.permute.xlu0 %945  ;;  %v987_v44 = vrot.slane %v986_v39, 4 }
 0x48f   : > { %v979_v32 = vmul.f32 %v946_v28, %v931_v26 }
 0x490   : > { %v988_v51 = vadd.f32 %v987_v44, %v986_v39 }
 0x491   : > { %v993_v36 = vsel %vm383_vm1, %v979_v32, 0.0 }
 0x492   : > { %v951_v33 = vpop.permute.xlu0 %950  ;;  %v994_v42 = vrot.slane %v993_v36, 4  ;;  %v989_v1 = vrot.slane %v988_v51, 2 }
 0x493   : > { %v980_v35 = vmul.f32 %v951_v33, %v932_v31 }
 0x494   : > { %v995_v48 = vadd.f32 %v994_v42, %v993_v36  ;;  %v990_v54 = vadd.f32 %v989_v1, %v988_v51 }
 0x495   : > { %v1000_v38 = vsel %vm383_vm1, %v980_v35, 0.0 }
 0x496   : > { %v956_v37 = vpop.permute.xlu0 %955  ;;  %v1001_v5 = vrot.slane %v1000_v38, 4  ;;  %v996_v60 = vrot.slane %v995_v48, 2  ;;  %v991_v9 = vrot.slane %v990_v54, 1 }
 0x497   : > { %v981_v40 = vmul.f32 %v956_v37, %v933_v12 }
 0x498   : > { %v1002_v49 = vadd.f32 %v1001_v5, %v1000_v38  ;;  %v997_v11 = vadd.f32 %v996_v60, %v995_v48  ;;  %v992_v33 = vadd.f32 %v991_v9, %v990_v54 }
 0x499   : > { %v1007_v43 = vsel %vm383_vm1, %v981_v40, 0.0 }
 0x49a   : > { %v1008_v45 = vrot.slane %v1007_v43, 4  ;;  %v961_v46 = vpop.permute.xlu0 %960  ;;  %v1003_v63 = vrot.slane %v1002_v49, 2  ;;  %v998_v21 = vrot.slane %v997_v11, 1 }
 0x49b   : > { %v982_v47 = vmul.f32 %v961_v46, %v934_v41 }
 0x49c   : > { %v1009_v52 = vadd.f32 %v1008_v45, %v1007_v43  ;;  %v1004_v16 = vadd.f32 %v1003_v63, %v1002_v49  ;;  %v999_v26 = vadd.f32 %v998_v21, %v997_v11 }
 0x49d   : > { %v1014_v50 = vsel %vm383_vm1, %v982_v47, 0.0 }
 0x49e   : > { %v1015_v53 = vrot.slane %v1014_v50, 4  ;;  %v966_v57 = vpop.permute.xlu0 %965  ;;  %v1010_v2 = vrot.slane %v1009_v52, 2  ;;  %v1005_v23 = vrot.slane %v1004_v16, 1  ;;  %v1050_v38 = vsel %vm714_vm2, %v999_v26, %v992_v33 }
 0x49f   : > { %v983_v58 = vmul.f32 %v966_v57, %v935_v6 }
 0x4a0   : > { %v1016_v62 = vadd.f32 %v1015_v53, %v1014_v50  ;;  %v1011_v17 = vadd.f32 %v1010_v2, %v1009_v52  ;;  %v1006_v32 = vadd.f32 %v1005_v23, %v1004_v16 }
 0x4a1   : > { %v1021_v0 = vsel %vm383_vm1, %v983_v58, 0.0 }
 0x4a2   : > { %v1022_v3 = vrot.slane %v1021_v0, 4  ;;  %v971_v7 = vpop.permute.xlu0 %970  ;;  %v1017_v8 = vrot.slane %v1016_v62, 2  ;;  %v1012_v24 = vrot.slane %v1011_v17, 1  ;;  %v1051_v40 = vsel %vm716_vm3, %v1006_v32, %v1050_v38 }
 0x4a3   : > { %v984_v30 = vmul.f32 %v971_v7, %v936_v59 }
 0x4a4   : > { %v1023_v15 = vadd.f32 %v1022_v3, %v1021_v0  ;;  %v1018_v61 = vadd.f32 %v1017_v8, %v1016_v62  ;;  %v1013_v34 = vadd.f32 %v1012_v24, %v1011_v17 }
 0x4a5   : > { %v1028_v27 = vsel %vm383_vm1, %v984_v30, 0.0 }
 0x4a6   : > { %v1024_v55 = vrot.slane %v1023_v15, 2  ;;  %v1029_v56 = vrot.slane %v1028_v27, 4  ;;  %v976_v19 = vpop.permute.xlu0 %975  ;;  %v1019_v18 = vrot.slane %v1018_v61, 1  ;;  %v1052_v42 = vsel %vm718_vm4, %v1013_v34, %v1051_v40 }
 0x4a7   : > { %v985_v20 = vmul.f32 %v976_v19, %v937_v10 }
 0x4a8   : > { %v1025_v4 = vadd.f32 %v1024_v55, %v1023_v15  ;;  %v1030_v22 = vadd.f32 %v1029_v56, %v1028_v27  ;;  %v1020_v36 = vadd.f32 %v1019_v18, %v1018_v61 }
 0x4a9   : > { %v1035_v13 = vsel %vm383_vm1, %v985_v20, 0.0 }
 0x4aa   : > { %v1031_v25 = vrot.slane %v1030_v22, 2  ;;  %v1036_v14 = vrot.slane %v1035_v13, 4  ;;  %v1026_v28 = vrot.slane %v1025_v4, 1  ;;  %v1053_v43 = vsel %vm720_vm5, %v1020_v36, %v1052_v42 }
 0x4ac   : > { %v1032_v29 = vadd.f32 %v1031_v25, %v1030_v22  ;;  %v1037_v31 = vadd.f32 %v1036_v14, %v1035_v13  ;;  %v1027_v37 = vadd.f32 %v1026_v28, %v1025_v4 }
 0x4ae   : > { %v1033_v35 = vrot.slane %v1032_v29, 1  ;;  %v1038_v12 = vrot.slane %v1037_v31, 2  ;;  %v1054_v44 = vsel %vm722_vm6, %v1027_v37, %v1053_v43 }
 0x4b0   : > { %v1039_v39 = vadd.f32 %v1038_v12, %v1037_v31  ;;  %v1034_v41 = vadd.f32 %v1033_v35, %v1032_v29 }
 0x4b2   : > { %v1040_v5 = vrot.slane %v1039_v39, 1  ;;  %v1055_v46 = vsel %vm724_vm7, %v1034_v41, %v1054_v44 }
 0x4b4   : > { %v1041_v45 = vadd.f32 %v1040_v5, %v1039_v39 }
 0x4b6   : > { %v1056_v47 = vsel %vm726_vm8, %v1041_v45, %v1055_v46 }
 0x4b7   : > { %1058 = vst.msk [vmem:[%s335_s14] sm:$0xff] %vm383_vm1, %v1056_v47 }
 0x4b8   : > { %1519 = shalt.err (!%p1516_p7)
}
 0x4b9   : > { %s1520_s11 = scalar_lea.hbm %s2049_s7, 128  ;;  %s1524_s18 = scalar_lea.hbm %s2101_s6, 256 }
 0x4ba   : > { %p1521_p2 = scmp.ne.s32.totalorder %s2049_s7, %s1520_s11  ;;  %p1525_p0 = scmp.lt.u32.totalorder %s2049_s7, %s2101_s6 }
 0x4bb   : > { %p1526_p9 = scmp.lt.u32.totalorder %s1524_s18, %s1520_s11  ;;  %p1528_p1 = scmp.lt.u32.totalorder %s1520_s11, %s2049_s7 }
 0x4bc   : > { %p1522_p8 = pnand %p1521_p2, %p2131_p13 }
 0x4bd   : > { %p1527_p12 = por %p1526_p9, %p1525_p0 }
 0x4be   : > { %p1523_p11 = pneg %p1522_p8 }
 0x4bf   : > { %p1529_p6 = por %p1528_p1, %p1527_p12 }
 0x4c1   : > { %p1530_p10 = pnand %p1529_p6, %p1523_p11 }
 0x4c3   : > { %1533 = shalt.err (!%p1530_p10)
}
 0x4c4   : > { %1262 = dma.vmem_to_hbm [thread:$0]  (%p2131_p13), %s2051_s2, 128, %s2049_s7, %s1060_s25  }
 0x4c5 PF: > { %s1085_s19 = sand.u32 1, %s1572_s21   ;;  %p2132_p4 = scmp.ne.s32.totalorder %s2112_s28, 0 }
 0x4c6   : > { %p2133_p5 = scmp.ge.s32.totalorder %s1584_s24, 2  ;;  %s1086_s16 = scalar_lea.sflag [#allocation4], %s1085_s19 }
 0x4c8   : > { %p1279_p3 = pnand %p2133_p5, %p2132_p4 }
 0x4ca   : > { %1567 = dma.done.wait (!%p1279_p3), %s1086_s16, 128  }
 0x4cb   : > { %1569 = vsyncadd (!%p1279_p3), %s1086_s16, 4294967168  ;;  %s2134_s17 = sld [smem:[#allocation16_spill]]  ;;  %p23_p7 = scmp.ge.s32.totalorder %s1748_s8, 4  }
 0x4cc   : > { %s2135_s21 = smov %s1576_s22  ;;  %s2136_s22 = smov %s1580_s23 }
 0x4cd   : > { %s2138_s24 = smov %s1748_s8  ;;  %25 = sbr.rel (!%p23_p7) target bundleno = 12 (0xc), region = 110 }
 0x4d1   : > { %s2137_s23 = smov %s2134_s17 }
 0x4d4   :  { %1091 = vsyncpa [#allocation3], 1 }
 0x4d5   :  { %1093 = vsyncpa [#allocation3 + $0x1], 1 }
 0x4d6   :  { %1094 = vsyncpa [#allocation6], 1 }
 0x4d7   :  { %1096 = vsyncpa [#allocation6 + $0x1], 1 }
 0x4d8   :  { %1097 = vsyncpa [#allocation9], 1 }
 0x4d9   :  { %1098 = vsyncpa [#allocation4], 1 }
 0x4da   :  { %1100 = vsyncpa [#allocation4 + $0x1], 1 }

</bundles_post_ra>
